<compile_context>
chip_gen: v7x
topology: tpu7x:2x2x1
jax: 0.10.0
libtpu: 0.0.40
codegen_flags: <defaults>
</compile_context>

<pallas_src>
import functools
import math

import jax
import jax.numpy as jnp
from jax.experimental import pallas as pl
from jax.experimental.pallas import tpu as pltpu

_LANE = 128


def _keep_threshold_u32(keep_prob: float) -> int:
    """uint32 threshold t with P(bits < t) == keep_prob for bits ~ U[0, 2^32)."""
    t = int(round(keep_prob * float(2 ** 32)))
    return max(0, min(t, 2 ** 32 - 1))


def _native_sublane(itemsize: int) -> int:
    # Native rows per (sublane) tile: f32 -> 8, bf16/fp16 -> 16, int8/fp8 -> 32.
    return max(8, 32 // max(itemsize, 1))


def _block_budget():
    """(per-buffer block bytes, vmem_limit_bytes), tuned per TPU generation."""
    try:
        cap = int(getattr(pltpu.get_tpu_info(), "vmem_capacity_bytes", 128 << 20))
    except Exception:  # defensive: interpret mode / emulators
        cap = 128 << 20
    if cap >= (96 << 20):          # v5e / v6e: 128 MiB VMEM per TensorCore
        return 8 << 20, 64 << 20   # 4 x 8 MiB pipeline buffers + mask << 64 MiB
    return 4 << 20, 32 << 20       # v7x: 64 MiB VMEM per TensorCore


def _pick_tiles_seq_major(rows, width, itemsize, block_bytes, sublane):
    """Joint budget for the (T, B*H) layout: t_rows * t_lane * itemsize <= block."""
    # Lane tile: full width if even `sublane` rows of it fit the budget,
    # otherwise the largest multiple of 128 that does.
    cap = max(_LANE, (block_bytes // (sublane * itemsize)) // _LANE * _LANE)
    t_lane = width if width <= cap else cap
    # Row tile under the remaining budget, sublane-aligned (or full extent).
    max_rows = max(sublane, (block_bytes // (t_lane * itemsize)) // sublane * sublane)
    t_rows = rows if rows <= max_rows else max_rows
    return t_rows, t_lane


def _pick_tiles_batch_major(B, T, H, itemsize, block_bytes, sublane):
    """Tiles for the lane-collapsed (B, T*H) layout with an H-periodic mask."""
    TH = T * H
    lane_q = (H * _LANE) // math.gcd(H, _LANE)           # lcm(H, 128)
    rows_min = min(B, sublane)
    cap_budget = block_bytes // (itemsize * rows_min)     # joint VMEM budget
    cap_mask = (4 << 20) // (itemsize * max(B, 1))        # keep tiled mask small
    cap = max(lane_q, (min(cap_budget, cap_mask) // lane_q) * lane_q)
    t_lane = min(TH, cap)                                 # multiple of H by construction
    max_b = max(1, block_bytes // (t_lane * itemsize))
    if max_b >= B:
        t_b = B                                           # full extent (always legal)
    else:
        t_b = min(B, max(sublane, (max_b // sublane) * sublane))
    return t_b, t_lane


def _vdrop_kernel(m_ref, x_ref, o_ref):
    # Pure HBM-streaming elementwise multiply.  The mask block either matches
    # the x block exactly (batch_first) or is a single row broadcast over the
    # row (seq) axis of the block (seq-major).
    o_ref[...] = x_ref[...] * m_ref[...]


def variational_dropout(x, seed, dropout, batch_first=False, training=True,
                        donate_x=False):
    """JAX/Pallas equivalent of VariationalDropout.forward on a dense tensor.

    x: (seq, batch, hidden) if batch_first=False else (batch, seq, hidden).
    """
    # TODO(synk): PackedSequence (ragged batch) inputs have no clean Pallas
    # equivalent here; only dense tensors are handled.
    if (not training) or dropout <= 0.0:
        return x

    keep_prob = float(1.0 - dropout)
    scale = 1.0 / keep_prob
    threshold = _keep_threshold_u32(keep_prob)

    if batch_first:
        B, T, H = x.shape
    else:
        T, B, H = x.shape

    # One locked mask per (batch, hidden); precomputed as {1/keep_prob, 0}
    # values in x.dtype so the kernel is a single multiply and mask DMA is
    # minimal (half/quarter the bytes of raw uint32 bits for 16/8-bit dtypes).
    bits = jax.random.bits(jax.random.PRNGKey(seed), (B, H), dtype=jnp.uint32)
    mask_vals = jnp.where(bits < jnp.uint32(threshold), scale, 0.0).astype(x.dtype)

    itemsize = jnp.dtype(x.dtype).itemsize
    sublane = _native_sublane(itemsize)
    block_bytes, vmem_limit = _block_budget()

    if not batch_first:
        # Lane-dense layout (T, B*H); mask is one (1, B*H) row shared over seq.
        BH = B * H
        x2 = x.reshape(T, BH)
        m2 = mask_vals.reshape(1, BH)
        t_rows, t_lane = _pick_tiles_seq_major(T, BH, itemsize, block_bytes, sublane)
        n_lane, n_rows = pl.cdiv(BH, t_lane), pl.cdiv(T, t_rows)
        if n_lane == 1:
            # Mask fits one lane tile: 1-D grid over row tiles; mask block index
            # never changes -> loaded once, resident for the whole kernel.  The
            # single grid axis is "parallel" so v7x can shard it across 2 TCs.
            grid = (n_rows,)
            in_specs = [pl.BlockSpec((1, t_lane), lambda t: (0, 0)),
                        pl.BlockSpec((t_rows, t_lane), lambda t: (t, 0))]
            out_specs = pl.BlockSpec((t_rows, t_lane), lambda t: (t, 0))
            dim_sem = ("parallel",)
        else:
            # Seq innermost: the (1, t_lane) mask block index (0, j) is constant
            # across consecutive steps -> Pallas skips its re-DMA.
            grid = (n_lane, n_rows)
            in_specs = [pl.BlockSpec((1, t_lane), lambda j, t: (0, j)),
                        pl.BlockSpec((t_rows, t_lane), lambda j, t: (t, j))]
            out_specs = pl.BlockSpec((t_rows, t_lane), lambda j, t: (t, j))
            dim_sem = ("parallel", "parallel")
        out_shape = jax.ShapeDtypeStruct((T, BH), x.dtype)
        operands = (m2, x2)
        mask_bytes = m2.size * itemsize
    else:
        # (B, T, H) -> (B, T*H): lane-dense even for small / unaligned H.  The
        # (B, H) mask is replicated along lanes with period H up to one lane
        # tile (a multiple of lcm(H, 128)), so stores are full-lane vst without
        # any wrapper transpose.
        TH = T * H
        x2 = x.reshape(B, TH)
        t_b, t_lane = _pick_tiles_batch_major(B, T, H, itemsize, block_bytes, sublane)
        rep = t_lane // H
        m2 = jnp.tile(mask_vals[:, None, :], (1, rep, 1)).reshape(B, t_lane)
        # Lane tiles innermost: per-batch-block mask index (b, 0) is constant
        # across consecutive steps -> mask stays resident in VMEM.
        grid = (pl.cdiv(B, t_b), pl.cdiv(TH, t_lane))
        in_specs = [pl.BlockSpec((t_b, t_lane), lambda b, j: (b, 0)),
                    pl.BlockSpec((t_b, t_lane), lambda b, j: (b, j))]
        out_specs = pl.BlockSpec((t_b, t_lane), lambda b, j: (b, j))
        dim_sem = ("parallel", "parallel")
        out_shape = jax.ShapeDtypeStruct((B, TH), x.dtype)
        operands = (m2, x2)
        mask_bytes = m2.size * itemsize

    call_kwargs = dict(
        out_shape=out_shape,
        grid_spec=pltpu.PrefetchScalarGridSpec(
            num_scalar_prefetch=0,
            grid=grid,
            in_specs=in_specs,
            out_specs=out_specs,
        ),
        compiler_params=pltpu.CompilerParams(
            dimension_semantics=dim_sem,
            vmem_limit_bytes=vmem_limit,
        ),
        cost_estimate=pl.CostEstimate(
            flops=x.size,
            transcendentals=0,
            bytes_accessed=2 * x.size * itemsize + int(mask_bytes),
        ),
    )
    if donate_x:
        # Alias x (operand index 1) into the output when the caller no longer
        # needs x (halves the HBM footprint of this op).
        call_kwargs["input_output_aliases"] = {1: 0}

    out = pl.pallas_call(_vdrop_kernel, **call_kwargs)(*operands)

    if not batch_first:
        return out.reshape(T, B, H)
    return out.reshape(B, T, H)


if __name__ == "__main__":
    key = jax.random.PRNGKey(0)
    seq, batch, hidden = 8, 2, 32
    dropout = 0.3
    seed = 1234
    keep_prob = 1.0 - dropout

    x = jax.random.normal(key, (seq, batch, hidden), dtype=jnp.float32)

    # Pure-JAX reference using the same bits / threshold / mask values.
    bits = jax.random.bits(jax.random.PRNGKey(seed), (batch, hidden),
                           dtype=jnp.uint32)
    keep = bits < jnp.uint32(_keep_threshold_u32(keep_prob))
    mask_vals = jnp.where(keep, 1.0 / keep_prob, 0.0).astype(x.dtype)

    # --- seq-major (batch_first=False) -------------------------------------
    out = variational_dropout(x, seed=seed, dropout=dropout,
                              batch_first=False, training=True)
    out = jax.block_until_ready(out)
    assert out.shape == x.shape and out.dtype == x.dtype
    expected = (x * mask_vals[None, :, :]).astype(x.dtype)
    assert bool(jnp.allclose(out, expected, rtol=1e-6, atol=1e-6)), \
        "seq-major output mismatch vs reference"

    # Locked-dropout property: dropped pattern identical across the seq axis.
    dropped = (out == 0.0)
    assert bool(jnp.all(dropped == dropped[0:1])), "mask must be shared over seq"

    # --- batch-major (batch_first=True), no wrapper transpose --------------
    xb = jnp.swapaxes(x, 0, 1)    # (batch, seq, hidden) test input
    out_b = variational_dropout(xb, seed=seed, dropout=dropout,
                                batch_first=True, training=True)
    out_b = jax.block_until_ready(out_b)
    expected_b = (xb * mask_vals[:, None, :]).astype(xb.dtype)
    assert bool(jnp.allclose(out_b, expected_b, rtol=1e-6, atol=1e-6)), \
        "batch_first output mismatch vs reference"

    # --- eval mode / p<=0 is identity ---------------------------------------
    out_eval = variational_dropout(x, seed=seed, dropout=dropout, training=False)
    assert bool(jnp.all(out_eval == x))

    print("KERNEL_OK")
</pallas_src>

<mosaic_0001>
module attributes {stable_mosaic.version = 11 : i64} {
  func.func @_vdrop_kernel(%arg0: i32, %arg1: memref<1x64xf32, #tpu.memory_space<vmem>>, %arg2: memref<8x64xf32, #tpu.memory_space<vmem>>, %arg3: memref<8x64xf32, #tpu.memory_space<vmem>>) attributes {dimension_semantics = [#tpu.dimension_semantics<parallel>], iteration_bounds = array<i64: 1>, scalar_prefetch = 0 : i64, scratch_operands = 0 : i64, tpu.core_type = #tpu.core_type<tc>, window_params = [{pipeline_mode = #tpu.pipeline_mode<synchronous>, transform_indices = @transform_0, window_bounds = array<i64: 1, 64>}, {transform_indices = @transform_1, window_bounds = array<i64: 8, 64>}, {transform_indices = @transform_2, window_bounds = array<i64: 8, 64>}]} {
    %c0 = arith.constant 0 : index
    %c0_0 = arith.constant 0 : index
    %0 = vector.load %arg2[%c0, %c0_0] : memref<8x64xf32, #tpu.memory_space<vmem>>, vector<8x64xf32>
    %c0_1 = arith.constant 0 : index
    %c0_2 = arith.constant 0 : index
    %1 = vector.load %arg1[%c0_1, %c0_2] : memref<1x64xf32, #tpu.memory_space<vmem>>, vector<1x64xf32>
    %2 = vector.broadcast %1 : vector<1x64xf32> to vector<8x64xf32>
    %3 = arith.mulf %0, %2 : vector<8x64xf32>
    %c0_3 = arith.constant 0 : index
    %c0_4 = arith.constant 0 : index
    %4 = vector.load %arg3[%c0_3, %c0_4] : memref<8x64xf32, #tpu.memory_space<vmem>>, vector<8x64xf32>
    tpu.vector_store %arg3[%c0_3, %c0_4], %3 {strides = array<i32>} : memref<8x64xf32, #tpu.memory_space<vmem>>, vector<8x64xf32>,
    return
  }
  func.func @transform_0(%arg0: i32) -> (i32, i32) {
    %c0_i32 = arith.constant 0 : i32
    %c0_i32_0 = arith.constant 0 : i32
    %c0_i32_1 = arith.constant 0 : i32
    return %c0_i32, %c0_i32_0 : i32, i32
  }
  func.func @transform_1(%arg0: i32) -> (i32, i32) {
    %c0_i32 = arith.constant 0 : i32
    %c0_i32_0 = arith.constant 0 : i32
    return %arg0, %c0_i32 : i32, i32
  }
  func.func @transform_2(%arg0: i32) -> (i32, i32) {
    %c0_i32 = arith.constant 0 : i32
    %c0_i32_0 = arith.constant 0 : i32
    return %arg0, %c0_i32 : i32, i32
  }
}

</mosaic_0001>

<bundles_post_ra>
// kernel: tpu_custom_call.1
= control target key start
LH: loop header
LB: loop body
LE: loop exit
PB: predicated region body
PF: predicated region fallthrough
CT: control target
= control target key end

     0   :  { %7 = vsyncpa [#allocation3], 0  ;;  %s193_s0 = inlined_call_operand.hbm [shape: f32[1,64], index: 0, kind: input, shape index: {}]   ;;  %s194_s1 = inlined_call_operand.hbm [shape: f32[8,64], index: 1, kind: input, shape index: {}]   ;;  %s195_s2 = inlined_call_operand.hbm [shape: f32[8,64], index: 2, kind: output, shape index: {}]  }
   0x1   :  { %8 = vsyncpa [#allocation6], 0 }
   0x2   :  { %9 = vsyncpa [#allocation4], 0  ;;  %s139_s9 = smov [#allocation2]   ;;  %s140_s11 = smov [#allocation5]  }
   0x3   :  { %s16_s10 = sshll.u32 %s139_s9, 4  ;;  %s26_s12 = sshll.u32 %s140_s11, 4  ;;  %s17_s10 = int_to_ptr.vmem [resolvable:$true] %s16_s10  ;;  %s27_s12 = int_to_ptr.vmem [resolvable:$true] %s26_s12 }
   0x4   :  { %s67_s15 = scalar_lea.hbm %s193_s0, 16 }
   0x5   :  { %p68_p0 = scmp.ne.s32.totalorder %s193_s0, %s67_s15  ;;  %p71_p1 = scmp.lt.u32.totalorder %s67_s15, %s193_s0 }
   0x7   :  { %p73_p2 = pnand %p71_p1, %p68_p0 }
   0x9   :  { %76 = shalt.err (!%p73_p2)
}
   0xa   :  { %s77_s20 = scalar_lea.vmem %s17_s10, 16  ;;  %s81_s21 = scalar_lea.vmem %s17_s10, 32 }
   0xb   :  { %p78_p3 = scmp.ne.s32.totalorder %s17_s10, %s77_s20  ;;  %p82_p4 = scmp.lt.s32.totalorder %s17_s10, %s17_s10 }
   0xc   :  { %p83_p5 = scmp.lt.s32.totalorder %s81_s21, %s77_s20 }
   0xe   :  { %p84_p6 = por %p83_p5, %p82_p4 }
  0x10   :  { %p85_p7 = pnand %p84_p6, %p78_p3 }
  0x12   :  { %88 = shalt.err (!%p85_p7)
}
  0x13   :  { %19 = dma.hbm_to_vmem [thread:$0]  %s193_s0, 16, %s17_s10, [#allocation3]  }
  0x14   :  { %s89_s26 = scalar_lea.hbm %s194_s1, 128 }
  0x15   :  { %p90_p8 = scmp.ne.s32.totalorder %s194_s1, %s89_s26  ;;  %p93_p9 = scmp.lt.u32.totalorder %s89_s26, %s194_s1 }
  0x17   :  { %p95_p10 = pnand %p93_p9, %p90_p8 }
  0x19   :  { %98 = shalt.err (!%p95_p10)
}
  0x1a   :  { %s99_s3 = scalar_lea.vmem %s27_s12, 128  ;;  %p104_p12 = scmp.lt.s32.totalorder %s27_s12, %s27_s12 }
  0x1b   :  { %p100_p11 = scmp.ne.s32.totalorder %s27_s12, %s99_s3  ;;  %p105_p13 = scmp.lt.s32.totalorder %s99_s3, %s99_s3 }
  0x1d   :  { %p106_p0 = por %p105_p13, %p104_p12 }
  0x1f   :  { %p107_p1 = pnand %p106_p0, %p100_p11 }
  0x21   :  { %110 = shalt.err (!%p107_p1)
}
  0x22   :  { %29 = dma.hbm_to_vmem [thread:$0]  %s194_s1, 128, %s27_s12, [#allocation6]  }
  0x23   :  { %133 = dma.done.wait [#allocation3], 16  }
  0x24   :  { %134 = vsyncadd [#allocation3], 4294967280 }
  0x25   :  { %135 = dma.done.wait [#allocation6], 128  }
  0x26   :  { %136 = vsyncadd [#allocation6], 4294967168  ;;  %s141_s5 = smov [#allocation7]   ;;  %v36_v0 = vld [vmem:[#allocation5] sm:$0xff]  ;;  %v63_v1 = vld [vmem:[#allocation2] ss:$0 sm:$0xff] }
  0x27   :  { %s53_s6 = sshll.u32 %s141_s5, 4  ;;  %vm45_vm0 = vcmask 523264   ;;  %v44_v2 = vmul.f32 %v63_v1, %v36_v0  ;;  %s54_s6 = int_to_ptr.vmem [resolvable:$true] %s53_s6 }
  0x28   :  { %s111_s7 = scalar_lea.vmem %s54_s6, 128  ;;  %p116_p3 = scmp.lt.s32.totalorder %s54_s6, %s54_s6 }
  0x29   :  { %46 = vst.msk [vmem:[#allocation7] sm:$0xff] %vm45_vm0, %v44_v2  ;;  %p112_p2 = scmp.ne.s32.totalorder %s54_s6, %s111_s7  ;;  %p117_p4 = scmp.lt.s32.totalorder %s111_s7, %s111_s7 }
  0x2b   :  { %p118_p5 = por %p117_p4, %p116_p3 }
  0x2d   :  { %p119_p6 = pnand %p118_p5, %p112_p2 }
  0x2f   :  { %122 = shalt.err (!%p119_p6)
}
  0x30   :  { %s123_s9 = scalar_lea.hbm %s195_s2, 128 }
  0x31   :  { %p124_p7 = scmp.ne.s32.totalorder %s195_s2, %s123_s9  ;;  %p127_p8 = scmp.lt.u32.totalorder %s123_s9, %s195_s2 }
  0x33   :  { %p129_p9 = pnand %p127_p8, %p124_p7 }
  0x35   :  { %132 = shalt.err (!%p129_p9)
}
  0x36   :  { %56 = dma.vmem_to_hbm [thread:$0]  %s54_s6, 128, %s195_s2, [#allocation4]  }
  0x37   :  { %137 = dma.done.wait [#allocation4], 128  }
  0x38   :  { %138 = vsyncadd [#allocation4], 4294967168 }
  0x39   :  { %60 = vsyncpa [#allocation3], 1 }
  0x3a   :  { %61 = vsyncpa [#allocation6], 1 }
  0x3b   :  { %62 = vsyncpa [#allocation4], 1 }

</bundles_post_ra>
